<compile_context>
chip_gen: v5e
topology: v5e:2x2
jax: 0.10.0
libtpu: 0.0.40
codegen_flags: <defaults>
</compile_context>

<pallas_src>
import jax
import jax.numpy as jnp
from jax.experimental import pallas as pl
from jax.experimental.pallas import tpu as pltpu

NUM_CLASS = 60
C_IN = 64
NPAD = 128  # lane-dense padded output width (60 -> 128)


def _agcn_kernel(x_ref, w_ref, b_ref, o_ref):
    # x_ref: (TN, M, C, R)  native dtype  (R = T*V, on lanes)
    # w_ref: (C, NPAD)      float32, pre-scaled by 1/(M*R); cols >= 60 are zero
    # b_ref: (1, NPAD)      float32; entries >= 60 are zero
    # o_ref: (TN, NPAD)     float32
    x = x_ref[...].astype(jnp.float32)        # no-op for f32 inputs
    xm = jnp.sum(x, axis=1)                   # (TN, C, R): VPU adds, shrink M-fold first
    pooled = jnp.sum(xm, axis=-1)             # (TN, C):    XLU cross-lane reduce
    o_ref[...] = jnp.dot(pooled, w_ref[...],
                         preferred_element_type=jnp.float32) + b_ref[...]


def _vmem_budget():
    """(per-input-buffer byte target, vmem_limit_bytes) sized to the chip."""
    try:
        cap = int(pltpu.get_tpu_info().vmem_capacity_bytes)
    except Exception:
        cap = 64 * 1024 * 1024                # conservative: v7x-sized VMEM
    if cap >= 100 * 1024 * 1024:              # v5e / v6e: 128 MiB VMEM
        return 24 * 1024 * 1024, 80 * 1024 * 1024
    return 14 * 1024 * 1024, 48 * 1024 * 1024  # v7x: 64 MiB VMEM


def _pick_tile(N, M, C, R, itemsize, target_bytes):
    """Batch tile TN: always a divisor of N (no padding, no ragged tail),
    preferably a multiple of 8 (clean sublane tiling), sized near target_bytes
    per double-buffered input block, and capped at N//2 for N>=16 so v7x's two
    TensorCores each get grid steps."""
    row_bytes = M * C * R * itemsize
    max_rows = max(1, target_bytes // row_bytes)
    if N >= 16:
        max_rows = min(max_rows, N // 2)      # >= 2 grid steps -> both v7x TCs stream
    hi = min(max_rows, N)
    for d in range(hi, 7, -1):                # multiple-of-8 divisor within budget
        if d % 8 == 0 and N % d == 0:
            return d
    if N <= max_rows:
        return N                              # whole batch: block == full array dims
    for d in range(hi, 0, -1):                # last resort: any divisor within budget
        if N % d == 0:
            return d
    return N


def agcn_classifier(x_nmctv, weight, bias):
    """x_nmctv: (N, M, C, T, V); weight: (num_class, C); bias: (num_class,)."""
    N, M, C, T, V = x_nmctv.shape
    assert C == C_IN, "fc expects 64 input channels"
    R = T * V

    # Free reshape (contiguous dims merge) — native layout, native dtype.
    x_k = x_nmctv.reshape(N, M, C, R)
    itemsize = jnp.dtype(x_k.dtype).itemsize

    # mean over T*V then over M == single 1/(M*R) scale; fold it into the
    # already-padded weight so the kernel skips the per-tile VPU multiply.
    inv = 1.0 / (M * R)
    w_k = jnp.zeros((C, NPAD), jnp.float32).at[:, :NUM_CLASS].set(
        weight.T.astype(jnp.float32) * inv)
    b_k = jnp.zeros((1, NPAD), jnp.float32).at[0, :NUM_CLASS].set(
        bias.astype(jnp.float32))

    target_bytes, vmem_limit = _vmem_budget()
    TN = _pick_tile(N, M, C, R, itemsize, target_bytes)
    grid = (N // TN,)

    cost = pl.CostEstimate(
        flops=2 * N * C * NPAD + N * M * C * R,
        transcendentals=0,
        bytes_accessed=N * M * C * R * itemsize + N * NPAD * 4
                       + C * NPAD * 4 + NPAD * 4,
    )

    out = pl.pallas_call(
        _agcn_kernel,
        out_shape=jax.ShapeDtypeStruct((N, NPAD), jnp.float32),
        grid=grid,
        in_specs=[
            pl.BlockSpec((TN, M, C, R), lambda i: (i, 0, 0, 0)),
            pl.BlockSpec((C, NPAD), lambda i: (0, 0)),
            pl.BlockSpec((1, NPAD), lambda i: (0, 0)),
        ],
        out_specs=pl.BlockSpec((TN, NPAD), lambda i: (i, 0)),
        compiler_params=pltpu.CompilerParams(
            dimension_semantics=("parallel",),
            vmem_limit_bytes=vmem_limit,
        ),
        cost_estimate=cost,
    )(x_k, w_k, b_k)

    return out[:, :NUM_CLASS]


def _reference(x_nmctv, weight, bias):
    N, M, C, T, V = x_nmctv.shape
    x = x_nmctv.reshape(N, M, C, T * V).astype(jnp.float32)
    x = x.mean(axis=3).mean(axis=1)     # (N, C)
    return x @ weight.T + bias


if __name__ == "__main__":
    key = jax.random.PRNGKey(0)
    k_x, k_w, k_b = jax.random.split(key, 3)

    # small shapes consistent with the module: N=16, M=2, C=64, T=8, V=16
    # (N=16 exercises the multi-step grid: TN=8 -> grid=(2,))
    N, M, C, T, V = 16, 2, C_IN, 8, 16
    x = jax.random.normal(k_x, (N, M, C, T, V), dtype=jnp.float32)

    # fc params: weight ~ N(0, sqrt(2/num_class)), bias ~ U(-1/sqrt(64), 1/sqrt(64))
    w_std = (2.0 / NUM_CLASS) ** 0.5
    weight = w_std * jax.random.normal(k_w, (NUM_CLASS, C_IN), dtype=jnp.float32)
    bound = 1.0 / (C_IN ** 0.5)
    bias = jax.random.uniform(k_b, (NUM_CLASS,), minval=-bound, maxval=bound,
                              dtype=jnp.float32)

    out = jax.block_until_ready(agcn_classifier(x, weight, bias))

    ref = _reference(x, weight, bias)
    assert out.shape == (N, NUM_CLASS)
    assert jnp.allclose(out, ref, atol=1e-4, rtol=1e-4), "mismatch vs reference"

    print("KERNEL_OK")
</pallas_src>

<mosaic_0001>
module attributes {stable_mosaic.version = 11 : i64} {
  func.func @_agcn_kernel(%arg0: i32, %arg1: memref<8x2x64x128xf32, #tpu.memory_space<vmem>>, %arg2: memref<64x128xf32, #tpu.memory_space<vmem>>, %arg3: memref<1x128xf32, #tpu.memory_space<vmem>>, %arg4: memref<8x128xf32, #tpu.memory_space<vmem>>) attributes {dimension_semantics = [#tpu.dimension_semantics<parallel>], iteration_bounds = array<i64: 2>, scalar_prefetch = 0 : i64, scratch_operands = 0 : i64, tpu.core_type = #tpu.core_type<tc>, window_params = [{transform_indices = @transform_0, window_bounds = array<i64: 8, 2, 64, 128>}, {pipeline_mode = #tpu.pipeline_mode<synchronous>, transform_indices = @transform_1, window_bounds = array<i64: 64, 128>}, {pipeline_mode = #tpu.pipeline_mode<synchronous>, transform_indices = @transform_2, window_bounds = array<i64: 1, 128>}, {transform_indices = @transform_3, window_bounds = array<i64: 8, 128>}]} {
    %c0 = arith.constant 0 : index
    %c0_0 = arith.constant 0 : index
    %c0_1 = arith.constant 0 : index
    %c0_2 = arith.constant 0 : index
    %0 = vector.load %arg1[%c0, %c0_0, %c0_1, %c0_2] : memref<8x2x64x128xf32, #tpu.memory_space<vmem>>, vector<8x2x64x128xf32>
    %cst = arith.constant dense<0.000000e+00> : vector<8x64x128xf32>
    %1 = vector.multi_reduction <add>, %0, %cst [1] : vector<8x2x64x128xf32> to vector<8x64x128xf32>
    %cst_3 = arith.constant dense<0.000000e+00> : vector<8x64xf32>
    %2 = vector.multi_reduction <add>, %1, %cst_3 [2] : vector<8x64x128xf32> to vector<8x64xf32>
    %c0_4 = arith.constant 0 : index
    %c0_5 = arith.constant 0 : index
    %3 = vector.load %arg2[%c0_4, %c0_5] : memref<64x128xf32, #tpu.memory_space<vmem>>, vector<64x128xf32>
    %cst_6 = arith.constant dense<0.000000e+00> : vector<8x128xf32>
    %4 = tpu.matmul %2, %3, %cst_6 {dimension_numbers = #tpu.dot_dimension_numbers<[1], [0], [0], [1], [0, 0, 1, 1], [], []>} : vector<8x64xf32>, vector<64x128xf32>, vector<8x128xf32> -> vector<8x128xf32>
    %c0_7 = arith.constant 0 : index
    %c0_8 = arith.constant 0 : index
    %5 = vector.load %arg3[%c0_7, %c0_8] : memref<1x128xf32, #tpu.memory_space<vmem>>, vector<1x128xf32>
    %6 = vector.broadcast %5 : vector<1x128xf32> to vector<8x128xf32>
    %7 = arith.addf %4, %6 : vector<8x128xf32>
    %c0_9 = arith.constant 0 : index
    %c0_10 = arith.constant 0 : index
    %8 = vector.load %arg4[%c0_9, %c0_10] : memref<8x128xf32, #tpu.memory_space<vmem>>, vector<8x128xf32>
    tpu.vector_store %arg4[%c0_9, %c0_10], %7 {strides = array<i32>} : memref<8x128xf32, #tpu.memory_space<vmem>>, vector<8x128xf32>,
    return
  }
  func.func @transform_0(%arg0: i32) -> (i32, i32, i32, i32) {
    %c0_i32 = arith.constant 0 : i32
    %c0_i32_0 = arith.constant 0 : i32
    %c0_i32_1 = arith.constant 0 : i32
    %c0_i32_2 = arith.constant 0 : i32
    return %arg0, %c0_i32, %c0_i32_0, %c0_i32_1 : i32, i32, i32, i32
  }
  func.func @transform_1(%arg0: i32) -> (i32, i32) {
    %c0_i32 = arith.constant 0 : i32
    %c0_i32_0 = arith.constant 0 : i32
    %c0_i32_1 = arith.constant 0 : i32
    return %c0_i32, %c0_i32_0 : i32, i32
  }
  func.func @transform_2(%arg0: i32) -> (i32, i32) {
    %c0_i32 = arith.constant 0 : i32
    %c0_i32_0 = arith.constant 0 : i32
    %c0_i32_1 = arith.constant 0 : i32
    return %c0_i32, %c0_i32_0 : i32, i32
  }
  func.func @transform_3(%arg0: i32) -> (i32, i32) {
    %c0_i32 = arith.constant 0 : i32
    %c0_i32_0 = arith.constant 0 : i32
    return %arg0, %c0_i32 : i32, i32
  }
}

</mosaic_0001>

<bundles_post_ra>
// kernel: tpu_custom_call.1
= control target key start
LH: loop header
LB: loop body
LE: loop exit
PB: predicated region body
PF: predicated region fallthrough
CT: control target
= control target key end

     0   :  { %8 = vsyncpa [#allocation3], 0  ;;  %s1558_s0 = inlined_call_operand.hbm [shape: f32[16,2,64,128], index: 0, kind: input, shape index: {}]   ;;  %s1559_s1 = inlined_call_operand.hbm [shape: f32[64,128], index: 1, kind: input, shape index: {}]   ;;  %s1560_s2 = inlined_call_operand.vmem [shape: f32[1,128], index: 2, kind: input, shape index: {}]   ;;  %s1561_s3 = inlined_call_operand.hbm [shape: f32[16,128], index: 3, kind: output, shape index: {}]  }
   0x1   :  { %10 = vsyncpa [#allocation3 + $0x1], 0 }
   0x2   :  { %11 = vsyncpa [#allocation6], 0 }
   0x3   :  { %12 = vsyncpa [#allocation4], 0 }
   0x4   :  { %14 = vsyncpa [#allocation4 + $0x1], 0  ;;  %s1110_s12 = smov 0   ;;  %s1112_s13 = smov 0  }
   0x5   :  { %s1114_s14 = smov 0   ;;  %s1116_s15 = smov 0  }
   0x6 LB: > { %s1131_s16 = sadd.s32 4294967295, %s1085_s15   ;;  %s876_s17 = sadd.s32 4294967294, %s1085_s15   ;;  %s1085_s15 = sphi %s1116_s15, %s1571_s15   ;;  %s1081_s14 = sphi %s1114_s14, %s1570_s14   ;;  %s1077_s13 = sphi %s1112_s13, %s1569_s13   ;;  %s1073_s12 = sphi %s1110_s12, %s1568_s12  }
   0x7   : > { %p40_p0 = scmp.ne.s32.totalorder %s1077_s13, %s1073_s12  ;;  %p41_p1 = scmp.eq.s32.totalorder %s1131_s16, 0 }
   0x8   : > { %p106_p2 = scmp.eq.s32.totalorder %s1131_s16, 1  ;;  %p112_p3 = scmp.eq.s32.totalorder %s876_s17, 1 }
   0x9   : > { %p1140_p4 = por %p41_p1, %p40_p0  ;;  %p877_p5 = scmp.ge.s32.totalorder %s1085_s15, 1 }
   0xa   : > { %p1145_p6 = por %p112_p3, %p40_p0  ;;  %p119_p7 = scmp.lt.s32.totalorder %s1085_s15, 3 }
   0xb   : > { %s130_s22 = sshll.u32 %s1559_s1, 4  ;;  %s1087_s24 = smov [#allocation5]   ;;  %s131_s22 = int_to_ptr.hbm [resolvable:$true] %s130_s22 }
   0xc   : > { %p1153_p8 = pnand %p877_p5, %p119_p7  ;;  %s132_s25 = sshll.u32 %s1087_s24, 4  ;;  %s133_s25 = int_to_ptr.vmem [resolvable:$true] %s132_s25 }
   0xd   : > { %s1163_s26 = sadd.s32 1, %s1085_s15   ;;  %s1088_s27 = smov 128  }
   0xe   : > { %p903_p9 = pneg %p1153_p8  ;;  %s1089_s28 = smov 8  }
   0xf   : > { %s24_s29 = ssub.s32 %s1085_s15, %s1163_s26  ;;  %s27_s30 = sadd.s32 1, %s1081_s14 }
  0x10   : > { %p904_p10 = pnand %p903_p9, %p41_p1  ;;  %p25_p12 = scmp.eq.s32.totalorder %s24_s29, 0 }
  0x11   : > { %p34_p13 = scmp.ne.s32.totalorder %s1081_s14, %s1077_s13  ;;  %p35_p0 = scmp.eq.s32.totalorder %s1085_s15, 0 }
  0x12   : > { %906 = dma.hbm_to_vmem [thread:$0]  (!%p904_p10), %s131_s22, 1024, %s133_s25, [#allocation6], %s1088_s27, %s1088_s27, %s1089_s28  }
  0x13   : > { %s1175_s4 = scalar_select %p25_p12, %s1081_s14, %s27_s30  }
  0x14   : > { %p1179_p3 = por %p106_p2, %p34_p13  ;;  %p916_p5 = scmp.lt.s32.totalorder %s1085_s15, 2 }
  0x15   : > { %s149_s6 = sand.u32 1, %s1081_s14   ;;  %s894_s7 = sshll.u32 %s1085_s15, 10 }
  0x16   : > { %p36_p7 = por %p35_p0, %p34_p13  ;;  %s880_s8 = sshll.u32 %s149_s6, 10 }
  0x17   : > { %s159_s11 = scalar_lea.hbm %s1558_s0, %s894_s7  ;;  %s153_s20 = scalar_lea.vmem [#allocation2], %s880_s8 }
  0x18   : > { %s160_s17 = sshll.u32 %s159_s11, 4  ;;  %s162_s21 = sshll.u32 %s153_s20, 4  ;;  %s161_s17 = int_to_ptr.hbm [resolvable:$true] %s160_s17  ;;  %s163_s21 = int_to_ptr.vmem [resolvable:$true] %s162_s21 }
  0x19   : > { %p1189_p9 = pnand %p916_p5, %p36_p7  ;;  %s150_s24 = scalar_lea.sflag [#allocation3], %s149_s6 }
  0x1a   : > { %s985_s25 = sshra.s32 %s161_s17, 4  ;;  %s992_s8 = scalar_lea.hbm %s1558_s0, 2048  ;;  %s986_s25 = int_to_ptr.hbm [resolvable:$true] %s985_s25 }
  0x1b   : > { %s987_s29 = scalar_lea.hbm %s986_s25, 1024  ;;  %p989_p10 = pneg %p1189_p9 }
  0x1c   : > { %p988_p2 = scmp.ne.s32.totalorder %s986_s25, %s987_s29  ;;  %p993_p0 = scmp.lt.s32.totalorder %s986_s25, %s1558_s0 }
  0x1d   : > { %p994_p5 = scmp.lt.s32.totalorder %s992_s8, %s987_s29 }
  0x1e   : > { %p990_p12 = pnand %p989_p10, %p988_p2 }
  0x1f   : > { %p995_p7 = por %p994_p5, %p993_p0 }
  0x20   : > { %p991_p13 = pneg %p990_p12 }
  0x22   : > { %p996_p11 = pnand %p995_p7, %p991_p13 }
  0x24   : > { %999 = shalt.err (!%p996_p11)
}
  0x25   : > { %910 = dma.hbm_to_vmem [thread:$0]  (!%p1189_p9), %s161_s17, 16384, %s163_s21, %s150_s24, %s1088_s27, %s1088_s27, %s1089_s28  }
  0x26   : > { %174 = sbr.rel (%p1153_p8) target bundleno = 470 (0x1d6), region = 32  ;;  %s1209_s6 = sand.u32 (!%p1153_p8), 1, %s1077_s13  }
  0x27   : > { %s885_s11 = sshll.u32 (!%p1153_p8), %s1209_s6, 10  ;;  %s177_s20 = scalar_lea.sflag (!%p1153_p8), [#allocation3], %s1209_s6 }
  0x28   : > { %s1213_s25 = scalar_lea.vmem (!%p1153_p8), [#allocation2], %s885_s11 }
  0x2b   : > { %1060 = dma.done.wait (%p1140_p4), %s177_s20, 16384  }
  0x2c   : > { %1062 = vsyncadd (%p1140_p4), %s177_s20, 4294950912 }
  0x2d   : > { %1064 = dma.done.wait (%p41_p1), [#allocation6], 1024  }
  0x2e   : > { %1066 = vsyncadd (%p41_p1), [#allocation6], 4294966272  ;;  %v227_v0 = vld [vmem:[%s1213_s25 + $0x88] sm:$0xff]  ;;  %v212_v2 = vld [vmem:[%s1213_s25 + $0x10] sm:$0xff]  ;;  %vm611_vm0 = vcmask 130112   ;;  %vm615_vm1 = vcmask 195712  }
  0x2f   : > { %v235_v1 = vld [vmem:[%s1213_s25 + $0xc8] sm:$0xff]  ;;  %v220_v4 = vld [vmem:[%s1213_s25 + $0x50] sm:$0xff]  ;;  %v210_v5 = vld [vmem:[%s1213_s25] sm:$0xff]  ;;  %vm619_vm2 = vcmask 261312   ;;  %vm623_vm3 = vcmask 326912   ;;  %vm627_vm4 = vcmask 392512  }
  0x30   : > { %v347_v3 = vadd.f32 %v235_v1, %v227_v0  ;;  %v218_v6 = vld [vmem:[%s1213_s25 + $0x40] sm:$0xff]  ;;  %v340_v7 = vadd.f32 %v220_v4, %v212_v2  ;;  %v228_v9 = vld [vmem:[%s1213_s25 + $0x90] sm:$0xff]  ;;  %v211_v13 = vld [vmem:[%s1213_s25 + $0x8] sm:$0xff]  ;;  %vm631_vm5 = vcmask 458112   ;;  %vm635_vm6 = vcmask 523712   ;;  %s887_s18 = sshll.u32 %s1209_s6, 3 }
  0x31   : > { %v338_v8 = vadd.f32 %v218_v6, %v210_v5  ;;  %v236_v10 = vld [vmem:[%s1213_s25 + $0xd0] sm:$0xff]  ;;  %v226_v11 = vld [vmem:[%s1213_s25 + $0x80] sm:$0xff]  ;;  %v219_v14 = vld [vmem:[%s1213_s25 + $0x48] sm:$0xff]  ;;  %vm742_vm7 = vcmask 1041409   ;;  %vm744_vm8 = vcmask 1042434   ;;  %vm746_vm9 = vcmask 1043459  }
  0x32   : > { %420 = vadd.xlane.f32.xlu2 %v347_v3  ;;  %406 = vadd.xlane.f32.xlu1 %v340_v7  ;;  %v234_v12 = vld [vmem:[%s1213_s25 + $0xc0] sm:$0xff]  ;;  %v348_v15 = vadd.f32 %v236_v10, %v228_v9  ;;  %v339_v17 = vadd.f32 %v219_v14, %v211_v13  ;;  %v213_v18 = vld [vmem:[%s1213_s25 + $0x18] sm:$0xff]  ;;  %v243_v20 = vld [vmem:[%s1213_s25 + $0x108] sm:$0xff]  ;;  %vm748_vm10 = vcmask 1044484   ;;  %vm750_vm11 = vcmask 1045509   ;;  %s890_s23 = sshll.u32 %s1131_s16, 3 }
  0x33   : > { %402 = vadd.xlane.f32.xlu0 %v338_v8  ;;  %v346_v16 = vadd.f32 %v234_v12, %v226_v11  ;;  %v221_v19 = vld [vmem:[%s1213_s25 + $0x58] sm:$0xff]  ;;  %v251_v21 = vld [vmem:[%s1213_s25 + $0x148] sm:$0xff]  ;;  %v242_v22 = vld [vmem:[%s1213_s25 + $0x100] sm:$0xff]  ;;  %vm752_vm12 = vcmask 1046534   ;;  %vm754_vm13 = vcmask 1047559   ;;  %vm756_vm14 = vcmask 523264   ;;  %s791_s17 = scalar_lea.hbm %s1561_s3, %s890_s23 }
  0x34   : > { %v250_v23 = vld [vmem:[%s1213_s25 + $0x140] sm:$0xff]  ;;  %v341_v24 = vadd.f32 %v221_v19, %v213_v18  ;;  %v355_v25 = vadd.f32 %v251_v21, %v243_v20  ;;  %v244_v29 = vld [vmem:[%s1213_s25 + $0x110] sm:$0xff]  ;;  %v229_v31 = vld [vmem:[%s1213_s25 + $0x98] sm:$0xff]  ;;  %s208_s24 = scalar_lea.vmem [#allocation7], %s887_s18  ;;  %s795_s30 = sshll.u32 %s791_s17, 4  ;;  %s796_s30 = int_to_ptr.hbm [resolvable:$true] %s795_s30 }
  0x35   : > { %v354_v26 = vadd.f32 %v250_v23, %v242_v22  ;;  %v258_v27 = vld [vmem:[%s1213_s25 + $0x180] sm:$0xff]  ;;  %v252_v30 = vld [vmem:[%s1213_s25 + $0x150] sm:$0xff]  ;;  %v237_v32 = vld [vmem:[%s1213_s25 + $0xd8] sm:$0xff]  ;;  %s793_s29 = sshll.u32 %s208_s24, 4  ;;  %s781_s7 = scalar_lea.sflag [#allocation4], %s1209_s6  ;;  %s794_s29 = int_to_ptr.vmem [resolvable:$true] %s793_s29 }
  0x36   : > { %v266_v28 = vld [vmem:[%s1213_s25 + $0x1c0] sm:$0xff]  ;;  %v356_v34 = vadd.f32 %v252_v30, %v244_v29  ;;  %v349_v35 = vadd.f32 %v237_v32, %v229_v31  ;;  %v259_v40 = vld [vmem:[%s1213_s25 + $0x188] sm:$0xff]  ;;  %v260_v47 = vld [vmem:[%s1213_s25 + $0x190] sm:$0xff]  ;;  %s1029_s8 = sshra.s32 %s796_s30, 4  ;;  %s1035_s11 = scalar_lea.hbm %s1561_s3, 16  ;;  %s1030_s8 = int_to_ptr.hbm [resolvable:$true] %s1029_s8 }
  0x37   : > { %v362_v33 = vadd.f32 %v266_v28, %v258_v27  ;;  %v230_v36 = vld [vmem:[%s1213_s25 + $0xa0] sm:$0xff]  ;;  %v267_v41 = vld [vmem:[%s1213_s25 + $0x1c8] sm:$0xff]  ;;  %v268_v48 = vld [vmem:[%s1213_s25 + $0x1d0] sm:$0xff]  ;;  %s1031_s16 = scalar_lea.hbm %s1030_s8, 8  ;;  %p1036_p11 = scmp.lt.s32.totalorder %s1030_s8, %s1561_s3 }
  0x38   : > { %v238_v37 = vld [vmem:[%s1213_s25 + $0xe0] sm:$0xff]  ;;  %v363_v44 = vadd.f32 %v267_v41, %v259_v40  ;;  %v245_v49 = vld [vmem:[%s1213_s25 + $0x118] sm:$0xff]  ;;  %v364_v52 = vadd.f32 %v268_v48, %v260_v47  ;;  %v231_v54 = vld [vmem:[%s1213_s25 + $0xa8] sm:$0xff]  ;;  %p1032_p1 = scmp.ne.s32.totalorder %s1030_s8, %s1031_s16  ;;  %p1037_p9 = scmp.lt.s32.totalorder %s1035_s11, %s1031_s16 }
  0x39   : > { %v214_v38 = vld [vmem:[%s1213_s25 + $0x20] sm:$0xff]  ;;  %v350_v42 = vadd.f32 %v238_v37, %v230_v36  ;;  %v253_v50 = vld [vmem:[%s1213_s25 + $0x158] sm:$0xff]  ;;  %v239_v55 = vld [vmem:[%s1213_s25 + $0xe8] sm:$0xff] }
  0x3a   : > { %422 = vadd.xlane.f32.xlu2 %v348_v15  ;;  %418 = vadd.xlane.f32.xlu1 %v346_v16  ;;  %v222_v39 = vld [vmem:[%s1213_s25 + $0x60] sm:$0xff]  ;;  %v357_v53 = vadd.f32 %v253_v50, %v245_v49  ;;  %v215_v56 = vld [vmem:[%s1213_s25 + $0x28] sm:$0xff]  ;;  %v351_v60 = vadd.f32 %v239_v55, %v231_v54  ;;  %v276_v63 = vld [vmem:[%s1213_s25 + $0x210] sm:$0xff]  ;;  %p1033_p4 = pnand %p1032_p1, %p1179_p3  ;;  %p1038_p2 = por %p1037_p9, %p1036_p11 }
  0x3b   : > { %404 = vadd.xlane.f32.xlu0 %v339_v17  ;;  %v342_v43 = vadd.f32 %v222_v39, %v214_v38  ;;  %v274_v45 = vld [vmem:[%s1213_s25 + $0x200] sm:$0xff]  ;;  %v223_v57 = vld [vmem:[%s1213_s25 + $0x68] sm:$0xff]  ;;  %v284_v0 = vld [vmem:[%s1213_s25 + $0x250] sm:$0xff] }
  0x3c   : > { %v282_v46 = vld [vmem:[%s1213_s25 + $0x240] sm:$0xff]  ;;  %v275_v58 = vld [vmem:[%s1213_s25 + $0x208] sm:$0xff]  ;;  %v343_v61 = vadd.f32 %v223_v57, %v215_v56  ;;  %v261_v1 = vld [vmem:[%s1213_s25 + $0x198] sm:$0xff]  ;;  %v372_v5 = vadd.f32 %v284_v0, %v276_v63  ;;  %p1034_p8 = pneg %p1033_p4 }
  0x3d   : > { %v370_v51 = vadd.f32 %v282_v46, %v274_v45  ;;  %v283_v59 = vld [vmem:[%s1213_s25 + $0x248] sm:$0xff]  ;;  %v269_v2 = vld [vmem:[%s1213_s25 + $0x1d8] sm:$0xff]  ;;  %v246_v3 = vld [vmem:[%s1213_s25 + $0x120] sm:$0xff] }
  0x3e   : > { %v371_v62 = vadd.f32 %v283_v59, %v275_v58  ;;  %v254_v4 = vld [vmem:[%s1213_s25 + $0x160] sm:$0xff]  ;;  %v365_v6 = vadd.f32 %v269_v2, %v261_v1  ;;  %v216_v8 = vld [vmem:[%s1213_s25 + $0x30] sm:$0xff]  ;;  %v291_v10 = vld [vmem:[%s1213_s25 + $0x288] sm:$0xff]  ;;  %p1039_p10 = pnand %p1038_p2, %p1034_p8 }
  0x3f   : > { %v358_v7 = vadd.f32 %v254_v4, %v246_v3  ;;  %v224_v9 = vld [vmem:[%s1213_s25 + $0x70] sm:$0xff]  ;;  %v299_v11 = vld [vmem:[%s1213_s25 + $0x2c8] sm:$0xff]  ;;  %v290_v12 = vld [vmem:[%s1213_s25 + $0x280] sm:$0xff] }
  0x40   : > { %v298_v13 = vld [vmem:[%s1213_s25 + $0x2c0] sm:$0xff]  ;;  %v344_v14 = vadd.f32 %v224_v9, %v216_v8  ;;  %v379_v15 = vadd.f32 %v299_v11, %v291_v10  ;;  %v247_v19 = vld [vmem:[%s1213_s25 + $0x128] sm:$0xff]  ;;  %v232_v21 = vld [vmem:[%s1213_s25 + $0xb0] sm:$0xff] }
  0x41   : > { %v378_v16 = vadd.f32 %v298_v13, %v290_v12  ;;  %v262_v17 = vld [vmem:[%s1213_s25 + $0x1a0] sm:$0xff]  ;;  %v255_v20 = vld [vmem:[%s1213_s25 + $0x168] sm:$0xff]  ;;  %v240_v22 = vld [vmem:[%s1213_s25 + $0xf0] sm:$0xff] }
  0x42   : > { %408 = vadd.xlane.f32.xlu2 %v341_v24  ;;  %436 = vadd.xlane.f32.xlu1 %v355_v25  ;;  %v270_v18 = vld [vmem:[%s1213_s25 + $0x1e0] sm:$0xff]  ;;  %v359_v24 = vadd.f32 %v255_v20, %v247_v19  ;;  %v352_v25 = vadd.f32 %v240_v22, %v232_v21  ;;  %v292_v28 = vld [vmem:[%s1213_s25 + $0x290] sm:$0xff]  ;;  %v277_v30 = vld [vmem:[%s1213_s25 + $0x218] sm:$0xff] }
  0x43   : > { %434 = vadd.xlane.f32.xlu0 %v354_v26  ;;  %v366_v23 = vadd.f32 %v270_v18, %v262_v17  ;;  %v306_v26 = vld [vmem:[%s1213_s25 + $0x300] sm:$0xff]  ;;  %v300_v29 = vld [vmem:[%s1213_s25 + $0x2d0] sm:$0xff]  ;;  %v285_v31 = vld [vmem:[%s1213_s25 + $0x258] sm:$0xff] }
  0x44   : > { %v314_v27 = vld [vmem:[%s1213_s25 + $0x340] sm:$0xff]  ;;  %v241_v36 = vld [vmem:[%s1213_s25 + $0xf8] sm:$0xff]  ;;  %v307_v39 = vld [vmem:[%s1213_s25 + $0x308] sm:$0xff] }
  0x45   : > { %v386_v32 = vadd.f32 %v314_v27, %v306_v26  ;;  %v217_v37 = vld [vmem:[%s1213_s25 + $0x38] sm:$0xff]  ;;  %v315_v40 = vld [vmem:[%s1213_s25 + $0x348] sm:$0xff]  ;;  %v286_v45 = vld [vmem:[%s1213_s25 + $0x260] sm:$0xff] }
  0x46   : > { %v225_v38 = vld [vmem:[%s1213_s25 + $0x78] sm:$0xff]  ;;  %v263_v46 = vld [vmem:[%s1213_s25 + $0x1a8] sm:$0xff]  ;;  %v248_v48 = vld [vmem:[%s1213_s25 + $0x130] sm:$0xff] }
  0x47   : > { %v271_v47 = vld [vmem:[%s1213_s25 + $0x1e8] sm:$0xff]  ;;  %v256_v49 = vld [vmem:[%s1213_s25 + $0x170] sm:$0xff]  ;;  %v330_v54 = vld [vmem:[%s1213_s25 + $0x3c0] sm:$0xff] }
  0x48   : > { %v308_v55 = vld [vmem:[%s1213_s25 + $0x310] sm:$0xff]  ;;  %v293_v57 = vld [vmem:[%s1213_s25 + $0x298] sm:$0xff]  ;;  %v323_v2 = vld [vmem:[%s1213_s25 + $0x388] sm:$0xff] }
  0x49   : > { %v316_v56 = vld [vmem:[%s1213_s25 + $0x350] sm:$0xff]  ;;  %v301_v58 = vld [vmem:[%s1213_s25 + $0x2d8] sm:$0xff]  ;;  %v331_v3 = vld [vmem:[%s1213_s25 + $0x3c8] sm:$0xff] }
  0x4a   : > { %450 = vadd.xlane.f32.xlu2 %v362_v33  ;;  %438 = vadd.xlane.f32.xlu1 %v356_v34  ;;  %v380_v33 = vadd.f32 %v300_v29, %v292_v28  ;;  %v373_v34 = vadd.f32 %v285_v31, %v277_v30  ;;  %v272_v63 = vld [vmem:[%s1213_s25 + $0x1f0] sm:$0xff]  ;;  %v249_v0 = vld [vmem:[%s1213_s25 + $0x138] sm:$0xff]  ;;  %v294_v10 = vld [vmem:[%s1213_s25 + $0x2a0] sm:$0xff] }
  0x4b   : > { %424 = vadd.xlane.f32.xlu0 %v349_v35  ;;  %v233_v35 = vld [vmem:[%s1213_s25 + $0xb8] sm:$0xff]  ;;  %v302_v11 = vld [vmem:[%s1213_s25 + $0x2e0] sm:$0xff]  ;;  %v279_v12 = vld [vmem:[%s1213_s25 + $0x228] sm:$0xff] }
  0x4c   : > { %v353_v41 = vadd.f32 %v241_v36, %v233_v35  ;;  %v257_v1 = vld [vmem:[%s1213_s25 + $0x178] sm:$0xff]  ;;  %v287_v13 = vld [vmem:[%s1213_s25 + $0x268] sm:$0xff]  ;;  %v382_v19 = vadd.f32 %v302_v11, %v294_v10  ;;  %v280_v22 = vld [vmem:[%s1213_s25 + $0x230] sm:$0xff] }
  0x4d   : > { %v309_v8 = vld [vmem:[%s1213_s25 + $0x318] sm:$0xff]  ;;  %v375_v20 = vadd.f32 %v287_v13, %v279_v12  ;;  %v324_v27 = vld [vmem:[%s1213_s25 + $0x390] sm:$0xff] }
  0x4e   : > { %v317_v9 = vld [vmem:[%s1213_s25 + $0x358] sm:$0xff]  ;;  %v332_v28 = vld [vmem:[%s1213_s25 + $0x3d0] sm:$0xff] }
  0x4f   : > { %v389_v17 = vadd.f32 %v317_v9, %v309_v8 }
  0x52   : > { %426 = vadd.xlane.f32.xlu2 %v350_v42  ;;  %410 = vadd.xlane.f32.xlu1 %v342_v43  ;;  %v345_v42 = vadd.f32 %v225_v38, %v217_v37  ;;  %v387_v43 = vadd.f32 %v315_v40, %v307_v39  ;;  %v396_v39 = vadd.f32 %v332_v28, %v324_v27 }
  0x53   : > { %452 = vadd.xlane.f32.xlu0 %v363_v44  ;;  %v278_v44 = vld [vmem:[%s1213_s25 + $0x220] sm:$0xff] }
  0x54   : > { %v374_v50 = vadd.f32 %v286_v45, %v278_v44 }
  0x5a   : > { %466 = vadd.xlane.f32.xlu2 %v370_v51  ;;  %454 = vadd.xlane.f32.xlu1 %v364_v52  ;;  %v367_v51 = vadd.f32 %v271_v47, %v263_v46  ;;  %v360_v52 = vadd.f32 %v256_v49, %v248_v48  ;;  %v325_v46 = vld [vmem:[%s1213_s25 + $0x398] sm:$0xff]  ;;  %v310_v48 = vld [vmem:[%s1213_s25 + $0x320] sm:$0xff] }
  0x5b   : > { %440 = vadd.xlane.f32.xlu0 %v357_v53  ;;  %v322_v53 = vld [vmem:[%s1213_s25 + $0x380] sm:$0xff]  ;;  %v333_v47 = vld [vmem:[%s1213_s25 + $0x3d8] sm:$0xff] }
  0x5c   : > { %v394_v59 = vadd.f32 %v330_v54, %v322_v53  ;;  %v318_v49 = vld [vmem:[%s1213_s25 + $0x360] sm:$0xff] }
  0x62   : > { %428 = vadd.xlane.f32.xlu2 %v351_v60  ;;  %412 = vadd.xlane.f32.xlu1 %v343_v61  ;;  %v388_v60 = vadd.f32 %v316_v56, %v308_v55  ;;  %v381_v61 = vadd.f32 %v301_v58, %v293_v57  ;;  %v397_v56 = vadd.f32 %v333_v47, %v325_v46 }
  0x63   : > { %468 = vadd.xlane.f32.xlu0 %v371_v62  ;;  %v264_v62 = vld [vmem:[%s1213_s25 + $0x1b0] sm:$0xff] }
  0x64   : > { %v368_v4 = vadd.f32 %v272_v63, %v264_v62  ;;  %v311_v63 = vld [vmem:[%s1213_s25 + $0x328] sm:$0xff] }
  0x6a   : > { %470 = vadd.xlane.f32.xlu2 %v372_v5  ;;  %456 = vadd.xlane.f32.xlu1 %v365_v6  ;;  %v361_v5 = vadd.f32 %v257_v1, %v249_v0  ;;  %v395_v6 = vadd.f32 %v331_v3, %v323_v2  ;;  %v319_v0 = vld [vmem:[%s1213_s25 + $0x368] sm:$0xff]  ;;  %v296_v1 = vld [vmem:[%s1213_s25 + $0x2b0] sm:$0xff]  ;;  %v281_v3 = vld [vmem:[%s1213_s25 + $0x238] sm:$0xff] }
  0x6b   : > { %442 = vadd.xlane.f32.xlu0 %v358_v7  ;;  %v606_v7 = vlaneseq  ;;  %v304_v2 = vld [vmem:[%s1213_s25 + $0x2f0] sm:$0xff]  ;;  %v391_v8 = vadd.f32 %v319_v0, %v311_v63 }
  0x6c   : > { %v384_v11 = vadd.f32 %v304_v2, %v296_v1 }
  0x6d   : > { %v1319_v18 = vand.u32 127, %v606_v7 }
  0x6f   : > { %v1322_v21 = vadd.s32 4294967288, %v1319_v18  ;;  %v1329_v26 = vadd.s32 4294967280, %v1319_v18 }
  0x72   : > { %414 = vadd.xlane.f32.xlu2 %v344_v14  ;;  %484 = vadd.xlane.f32.xlu1 %v379_v15 }
  0x73   : > { %482 = vadd.xlane.f32.xlu0 %v378_v16 }
  0x7a   : > { %458 = vadd.xlane.f32.xlu2 %v366_v23  ;;  %444 = vadd.xlane.f32.xlu1 %v359_v24  ;;  %v288_v23 = vld [vmem:[%s1213_s25 + $0x270] sm:$0xff]  ;;  %v265_v24 = vld [vmem:[%s1213_s25 + $0x1b8] sm:$0xff] }
  0x7b   : > { %430 = vadd.xlane.f32.xlu0 %v352_v25  ;;  %v273_v25 = vld [vmem:[%s1213_s25 + $0x1f8] sm:$0xff] }
  0x7c   : > { %v369_v35 = vadd.f32 %v273_v25, %v265_v24 }
  0x82   : > { %498 = vadd.xlane.f32.xlu2 %v386_v32  ;;  %486 = vadd.xlane.f32.xlu1 %v380_v33 }
  0x83   : > { %472 = vadd.xlane.f32.xlu0 %v373_v34  ;;  %v376_v34 = vadd.f32 %v288_v23, %v280_v22  ;;  %v326_v22 = vld [vmem:[%s1213_s25 + $0x3a0] sm:$0xff] }
  0x84   : > { %v334_v23 = vld [vmem:[%s1213_s25 + $0x3e0] sm:$0xff] }
  0x8a   : > { %432 = vadd.xlane.f32.xlu2 %v353_v41  ;;  %416 = vadd.xlane.f32.xlu1 %v345_v42 }
  0x8b   : > { %500 = vadd.xlane.f32.xlu0 %v387_v43  ;;  %v1342_v43 = vadd.s32 4294967272, %v1319_v18 }
  0x92   : > { %474 = vadd.xlane.f32.xlu2 %v374_v50  ;;  %460 = vadd.xlane.f32.xlu1 %v367_v51  ;;  %v295_v50 = vld [vmem:[%s1213_s25 + $0x2a8] sm:$0xff] }
  0x93   : > { %446 = vadd.xlane.f32.xlu0 %v360_v52  ;;  %v303_v51 = vld [vmem:[%s1213_s25 + $0x2e8] sm:$0xff] }
  0x9a   : > { %514 = vadd.xlane.f32.xlu2 %v394_v59  ;;  %502 = vadd.xlane.f32.xlu1 %v388_v60  ;;  %v390_v59 = vadd.f32 %v318_v49, %v310_v48  ;;  %v383_v60 = vadd.f32 %v303_v51, %v295_v50 }
  0x9b   : > { %488 = vadd.xlane.f32.xlu0 %v381_v61 }
  0xa2   : > { %462 = vadd.xlane.f32.xlu2 %v368_v4  ;;  %448 = vadd.xlane.f32.xlu1 %v361_v5  ;;  %v289_v4 = vld [vmem:[%s1213_s25 + $0x278] sm:$0xff] }
  0xa3   : > { %516 = vadd.xlane.f32.xlu0 %v395_v6  ;;  %v377_v12 = vadd.f32 %v289_v4, %v281_v3 }
  0xa5   : > { %v421_v14 = vpop.xlane.xlu2 %420  ;;  %v407_v15 = vpop.xlane.xlu1 %406 }
  0xa6   : > { %v403_v16 = vpop.xlane.xlu0 %402  ;;  %v638_v29 = vperm.slane %v421_v14, %v1322_v21  ;;  %v614_v40 = vperm.slane %v407_v15, %v1329_v26  ;;  %v1368_v15 = vadd.s32 4294967264, %v1319_v18 }
  0xa7   : > { %v608_v36 = vperm.slane %v403_v16, %v1319_v18  ;;  %v312_v16 = vld [vmem:[%s1213_s25 + $0x330] sm:$0xff] }
  0xaa   : > { %504 = vadd.xlane.f32.xlu2 %v389_v17  ;;  %490 = vadd.xlane.f32.xlu1 %v382_v19  ;;  %v320_v17 = vld [vmem:[%s1213_s25 + $0x370] sm:$0xff]  ;;  %v297_v19 = vld [vmem:[%s1213_s25 + $0x2b8] sm:$0xff] }
  0xab   : > { %476 = vadd.xlane.f32.xlu0 %v375_v20  ;;  %v305_v20 = vld [vmem:[%s1213_s25 + $0x2f8] sm:$0xff] }
  0xad   : > { %v423_v30 = vpop.xlane.xlu2 %422  ;;  %v419_v32 = vpop.xlane.xlu1 %418 }
  0xae   : > { %v640_v31 = vperm.slane %v423_v30, %v1329_v26  ;;  %v405_v33 = vpop.xlane.xlu0 %404  ;;  %v637_v37 = vperm.slane %v419_v32, %v1319_v18  ;;  %v392_v30 = vadd.f32 %v320_v17, %v312_v16 }
  0xaf   : > { %v610_v38 = vperm.slane %v405_v33, %v1322_v21  ;;  %v385_v33 = vadd.f32 %v305_v20, %v297_v19 }
  0xb0   : > { %v639_v41 = vsel %vm611_vm0, %v638_v29, %v637_v37 }
  0xb1   : > { %v612_v42 = vsel %vm611_vm0, %v610_v38, %v608_v36  ;;  %v641_v45 = vsel %vm615_vm1, %v640_v31, %v639_v41  ;;  %v313_v38 = vld [vmem:[%s1213_s25 + $0x338] sm:$0xff] }
  0xb2   : > { %478 = vadd.xlane.f32.xlu2 %v376_v34  ;;  %v616_v44 = vsel %vm615_vm1, %v614_v40, %v612_v42  ;;  %464 = vadd.xlane.f32.xlu1 %v369_v35  ;;  %v398_v34 = vadd.f32 %v334_v23, %v326_v22  ;;  %v336_v40 = vld [vmem:[%s1213_s25 + $0x3f0] sm:$0xff]  ;;  %v321_v41 = vld [vmem:[%s1213_s25 + $0x378] sm:$0xff]  ;;  %v327_v42 = vld [vmem:[%s1213_s25 + $0x3a8] sm:$0xff] }
  0xb3   : > { %518 = vadd.xlane.f32.xlu0 %v396_v39  ;;  %v328_v39 = vld [vmem:[%s1213_s25 + $0x3b0] sm:$0xff]  ;;  %v393_v51 = vadd.f32 %v321_v41, %v313_v38 }
  0xb4   : > { %v400_v48 = vadd.f32 %v336_v40, %v328_v39 }
  0xb5   : > { %v409_v52 = vpop.xlane.xlu2 %408  ;;  %v437_v54 = vpop.xlane.xlu1 %436 }
  0xb6   : > { %v618_v53 = vperm.slane %v409_v52, %v1342_v43  ;;  %v435_v55 = vpop.xlane.xlu0 %434  ;;  %v653_v57 = vperm.slane %v437_v54, %v1322_v21 }
  0xb7   : > { %v652_v58 = vperm.slane %v435_v55, %v1319_v18  ;;  %v1394_v55 = vadd.s32 4294967256, %v1319_v18 }
  0xb8   : > { %v620_v61 = vsel %vm619_vm2, %v618_v53, %v616_v44  ;;  %v335_v44 = vld [vmem:[%s1213_s25 + $0x3e8] sm:$0xff] }
  0xb9   : > { %v654_v62 = vsel %vm611_vm0, %v653_v57, %v652_v58  ;;  %v399_v52 = vadd.f32 %v335_v44, %v327_v42  ;;  %v337_v57 = vld [vmem:[%s1213_s25 + $0x3f8] sm:$0xff]  ;;  %v1434_v44 = vadd.s32 4294967240, %v1319_v18 }
  0xba   : > { %520 = vadd.xlane.f32.xlu2 %v397_v56  ;;  %506 = vadd.xlane.f32.xlu1 %v390_v59  ;;  %v329_v56 = vld [vmem:[%s1213_s25 + $0x3b8] sm:$0xff] }
  0xbb   : > { %492 = vadd.xlane.f32.xlu0 %v383_v60  ;;  %v401_v1 = vadd.f32 %v337_v57, %v329_v56 }
  0xbd   : > { %v451_v5 = vpop.xlane.xlu2 %450  ;;  %v439_v6 = vpop.xlane.xlu1 %438 }
  0xbe   : > { %v425_v7 = vpop.xlane.xlu0 %424  ;;  %v655_v9 = vperm.slane %v439_v6, %v1329_v26  ;;  %v667_v24 = vperm.slane %v451_v5, %v1319_v18 }
  0xbf   : > { %v642_v10 = vperm.slane %v425_v7, %v1342_v43 }
  0xc0   : > { %v656_v13 = vsel %vm615_vm1, %v655_v9, %v654_v62 }
  0xc1   : > { %v643_v14 = vsel %vm619_vm2, %v642_v10, %v641_v45 }
  0xc2   : > { %508 = vadd.xlane.f32.xlu2 %v391_v8  ;;  %494 = vadd.xlane.f32.xlu1 %v384_v11 }
  0xc3   : > { %480 = vadd.xlane.f32.xlu0 %v377_v12 }
  0xc5   : > { %v427_v25 = vpop.xlane.xlu2 %426  ;;  %v411_v28 = vpop.xlane.xlu1 %410 }
  0xc6   : > { %v644_v27 = vperm.slane %v427_v25, %v1368_v15  ;;  %v453_v29 = vpop.xlane.xlu0 %452  ;;  %v622_v31 = vperm.slane %v411_v28, %v1368_v15 }
  0xc7   : > { %v668_v32 = vperm.slane %v453_v29, %v1322_v21 }
  0xc8   : > { %v645_v35 = vsel %vm623_vm3, %v644_v27, %v643_v14  ;;  %v624_v36 = vsel %vm623_vm3, %v622_v31, %v620_v61  ;;  %v1412_v14 = vadd.s32 4294967248, %v1319_v18 }
  0xc9   : > { %v669_v37 = vsel %vm611_vm0, %v668_v32, %v667_v24 }
  0xca   : > { %510 = vadd.xlane.f32.xlu2 %v392_v30  ;;  %496 = vadd.xlane.f32.xlu1 %v385_v33 }
  0xcb   : > { %522 = vadd.xlane.f32.xlu0 %v398_v34 }
  0xcd   : > { %v467_v45 = vpop.xlane.xlu2 %466  ;;  %v455_v46 = vpop.xlane.xlu1 %454 }
  0xce   : > { %v441_v47 = vpop.xlane.xlu0 %440  ;;  %v670_v49 = vperm.slane %v455_v46, %v1329_v26  ;;  %v682_v58 = vperm.slane %v467_v45, %v1319_v18 }
  0xcf   : > { %v657_v50 = vperm.slane %v441_v47, %v1342_v43 }
  0xd0   : > { %v671_v53 = vsel %vm615_vm1, %v670_v49, %v669_v37 }
  0xd1   : > { %v658_v54 = vsel %vm619_vm2, %v657_v50, %v656_v13 }
  0xd2   : > { %526 = vadd.xlane.f32.xlu2 %v400_v48  ;;  %512 = vadd.xlane.f32.xlu1 %v393_v51 }
  0xd3   : > { %524 = vadd.xlane.f32.xlu0 %v399_v52 }
  0xd5   : > { %v429_v59 = vpop.xlane.xlu2 %428  ;;  %v413_v61 = vpop.xlane.xlu1 %412 }
  0xd6   : > { %v646_v60 = vperm.slane %v429_v59, %v1394_v55  ;;  %v469_v62 = vpop.xlane.xlu0 %468  ;;  %v626_v63 = vperm.slane %v413_v61, %v1394_v55 }
  0xd7   : > { %v683_v0 = vperm.slane %v469_v62, %v1322_v21 }
  0xd8   : > { %v647_v2 = vsel %vm627_vm4, %v646_v60, %v645_v35  ;;  %v628_v3 = vsel %vm627_vm4, %v626_v63, %v624_v36 }
  0xd9   : > { %v684_v4 = vsel %vm611_vm0, %v683_v0, %v682_v58 }
  0xdb   : > { %528 = vadd.xlane.f32.xlu0 %v401_v1 }
  0xdd   : > { %v471_v5 = vpop.xlane.xlu2 %470  ;;  %v457_v7 = vpop.xlane.xlu1 %456 }
  0xde   : > { %v685_v6 = vperm.slane %v471_v5, %v1329_v26  ;;  %v443_v8 = vpop.xlane.xlu0 %442  ;;  %v672_v9 = vperm.slane %v457_v7, %v1342_v43 }
  0xdf   : > { %v659_v10 = vperm.slane %v443_v8, %v1368_v15 }
  0xe0   : > { %v686_v11 = vsel %vm615_vm1, %v685_v6, %v684_v4  ;;  %v673_v12 = vsel %vm619_vm2, %v672_v9, %v671_v53 }
  0xe1   : > { %v660_v13 = vsel %vm623_vm3, %v659_v10, %v658_v54  ;;  %v537_v10 = vld [vmem:[#allocation5 + $0x38] sm:$0xff] }
  0xe2   : > { %767 = vmatpush.msra.mxu0 %v537_v10 }
  0xe5   : > { %v415_v16 = vpop.xlane.xlu2 %414  ;;  %v485_v19 = vpop.xlane.xlu1 %484 }
  0xe6   : > { %v630_v17 = vperm.slane %v415_v16, %v1412_v14  ;;  %v483_v20 = vpop.xlane.xlu0 %482  ;;  %v698_v22 = vperm.slane %v485_v19, %v1322_v21 }
  0xe7   : > { %v697_v23 = vperm.slane %v483_v20, %v1319_v18 }
  0xe8   : > { %v632_v24 = vsel %vm631_vm5, %v630_v17, %v628_v3 }
  0xe9   : > { %v699_v25 = vsel %vm611_vm0, %v698_v22, %v697_v23  ;;  %v535_v23 = vld [vmem:[#allocation5 + $0x28] sm:$0xff] }
  0xed   : > { %v459_v27 = vpop.xlane.xlu2 %458  ;;  %v445_v29 = vpop.xlane.xlu1 %444 }
  0xee   : > { %v674_v28 = vperm.slane %v459_v27, %v1368_v15  ;;  %v431_v30 = vpop.xlane.xlu0 %430  ;;  %v661_v31 = vperm.slane %v445_v29, %v1394_v55  ;;  %v534_v27 = vld [vmem:[#allocation5 + $0x20] sm:$0xff]  ;;  %v533_v29 = vld [vmem:[#allocation5 + $0x18] sm:$0xff] }
  0xef   : > { %v648_v32 = vperm.slane %v431_v30, %v1412_v14  ;;  %v532_v30 = vld [vmem:[#allocation5 + $0x10] sm:$0xff] }
  0xf0   : > { %v675_v33 = vsel %vm623_vm3, %v674_v28, %v673_v12  ;;  %v662_v34 = vsel %vm627_vm4, %v661_v31, %v660_v13 }
  0xf1   : > { %v649_v35 = vsel %vm631_vm5, %v648_v32, %v647_v2 }
  0xf5   : > { %v499_v36 = vpop.xlane.xlu2 %498  ;;  %v487_v37 = vpop.xlane.xlu1 %486 }
  0xf6   : > { %v473_v38 = vpop.xlane.xlu0 %472  ;;  %v700_v39 = vperm.slane %v487_v37, %v1329_v26  ;;  %v712_v45 = vperm.slane %v499_v36, %v1319_v18 }
  0xf7   : > { %v687_v40 = vperm.slane %v473_v38, %v1342_v43 }
  0xf8   : > { %v1428_v41 = vsel %vm615_vm1, %v700_v39, %v699_v25 }
  0xf9   : > { %v1431_v42 = vsel %vm619_vm2, %v687_v40, %v686_v11  ;;  %v536_v11 = vld [vmem:[#allocation5 + $0x30] sm:$0xff] }
  0xfa   : > { %768 = vmatpush.msra.mxu0 %v536_v11 }
  0xfc   : > { %769 = vmatpush.msra.mxu0 %v535_v23 }
  0xfd   : > { %v433_v46 = vpop.xlane.xlu2 %432  ;;  %v417_v48 = vpop.xlane.xlu1 %416 }
  0xfe   : > { %v650_v47 = vperm.slane %v433_v46, %v1434_v44  ;;  %v501_v49 = vpop.xlane.xlu0 %500  ;;  %v634_v50 = vperm.slane %v417_v48, %v1434_v44  ;;  %770 = vmatpush.msra.mxu0 %v534_v27 }
  0xff   : > { %v713_v51 = vperm.slane %v501_v49, %v1322_v21 }
 0x100   : > { %v651_v52 = vsel %vm635_vm6, %v650_v47, %v649_v35  ;;  %v636_v53 = vsel %vm635_vm6, %v634_v50, %v632_v24  ;;  %771 = vmatpush.msra.mxu0 %v533_v29  ;;  %v530_v35 = vld [vmem:[#allocation5] sm:$0xff] }
 0x101   : > { %v1443_v54 = vsel %vm611_vm0, %v713_v51, %v712_v45  ;;  %v743_v56 = vsel %vm742_vm7, %v651_v52, %v636_v53 }
 0x102   : > { %772 = vmatpush.msra.mxu0 %v532_v30 }
 0x105   : > { %v475_v57 = vpop.xlane.xlu2 %474  ;;  %v461_v58 = vpop.xlane.xlu1 %460 }
 0x106   : > { %v447_v59 = vpop.xlane.xlu0 %446  ;;  %v676_v12 = vperm.slane %v461_v58, %v1394_v55  ;;  %v689_v36 = vperm.slane %v475_v57, %v1368_v15 }
 0x107   : > { %v663_v60 = vperm.slane %v447_v59, %v1412_v14 }
 0x108   : > { %v677_v20 = vsel %vm627_vm4, %v676_v12, %v675_v33  ;;  %v531_v33 = vld [vmem:[#allocation5 + $0x8] sm:$0xff]  ;;  %v690_v40 = vsel %vm623_vm3, %v689_v36, %v1431_v42 }
 0x109   : > { %v664_v61 = vsel %vm631_vm5, %v663_v60, %v662_v34  ;;  %773 = vmatpush.msra.mxu0 %v531_v33 }
 0x10b   : > { %774 = vmatpush.msra.mxu0 %v530_v35 }
 0x10d   : > { %v1447_v62 = vpop.xlane.xlu2 %514  ;;  %v1449_v63 = vpop.xlane.xlu1 %502 }
 0x10e   : > { %v489_v0 = vpop.xlane.xlu0 %488 }
 0x10f   : > { %v702_v50 = vperm.slane %v489_v0, %v1342_v43 }
 0x111   : > { %v703_v57 = vsel %vm619_vm2, %v702_v50, %v1428_v41 }
 0x115   : > { %v463_v1 = vpop.xlane.xlu2 %462  ;;  %v449_v2 = vpop.xlane.xlu1 %448 }
 0x116   : > { %v1451_v3 = vpop.xlane.xlu0 %516  ;;  %v665_v4 = vperm.slane %v449_v2, %v1434_v44  ;;  %v678_v13 = vperm.slane %v463_v1, %v1412_v14  ;;  %v715_v2 = vperm.slane %v1449_v63, %v1329_v26  ;;  %v727_v63 = vperm.slane %v1447_v62, %v1319_v18 }
 0x117   : > { %v728_v12 = vperm.slane %v1451_v3, %v1322_v21 }
 0x118   : > { %v666_v5 = vsel %vm635_vm6, %v665_v4, %v664_v61  ;;  %v679_v24 = vsel %vm631_vm5, %v678_v13, %v677_v20  ;;  %v716_v10 = vsel %vm615_vm1, %v715_v2, %v1443_v54 }
 0x119   : > { %v745_v6 = vsel %vm744_vm8, %v666_v5, %v743_v56  ;;  %v729_v62 = vsel %vm611_vm0, %v728_v12, %v727_v63 }
 0x11d   : > { %v1455_v7 = vpop.xlane.xlu2 %504  ;;  %v491_v8 = vpop.xlane.xlu1 %490 }
 0x11e   : > { %v477_v9 = vpop.xlane.xlu0 %476  ;;  %v704_v52 = vperm.slane %v491_v8, %v1368_v15  ;;  %v717_v5 = vperm.slane %v1455_v7, %v1342_v43 }
 0x11f   : > { %v691_v37 = vperm.slane %v477_v9, %v1394_v55 }
 0x120   : > { %v705_v58 = vsel %vm623_vm3, %v704_v52, %v703_v57  ;;  %v718_v7 = vsel %vm619_vm2, %v717_v5, %v716_v10 }
 0x121   : > { %v692_v47 = vsel %vm627_vm4, %v691_v37, %v690_v40 }
 0x125   : > { %v479_v16 = vpop.xlane.xlu2 %478  ;;  %v465_v17 = vpop.xlane.xlu1 %464 }
 0x126   : > { %v1459_v19 = vpop.xlane.xlu0 %518  ;;  %v680_v22 = vperm.slane %v465_v17, %v1434_v44  ;;  %v693_v38 = vperm.slane %v479_v16, %v1412_v14 }
 0x127   : > { %v730_v13 = vperm.slane %v1459_v19, %v1329_v26 }
 0x128   : > { %v681_v25 = vsel %vm635_vm6, %v680_v22, %v679_v24  ;;  %v694_v49 = vsel %vm631_vm5, %v693_v38, %v692_v47 }
 0x129   : > { %v747_v28 = vsel %vm746_vm9, %v681_v25, %v745_v6 }
 0x12d   : > { %v1465_v31 = vpop.xlane.xlu2 %520  ;;  %v507_v32 = vpop.xlane.xlu1 %506 }
 0x12e   : > { %v493_v34 = vpop.xlane.xlu0 %492  ;;  %v719_v6 = vperm.slane %v507_v32, %v1368_v15  ;;  %v732_v54 = vperm.slane %v1465_v31, %v1342_v43  ;;  %v731_v43 = vsel %vm615_vm1, %v730_v13, %v729_v62 }
 0x12f   : > { %v706_v56 = vperm.slane %v493_v34, %v1394_v55 }
 0x130   : > { %v720_v16 = vsel %vm623_vm3, %v719_v6, %v718_v7  ;;  %v733_v25 = vsel %vm619_vm2, %v732_v54, %v731_v43 }
 0x131   : > { %v707_v61 = vsel %vm627_vm4, %v706_v56, %v705_v58 }
 0x135   : > { %v509_v39 = vpop.xlane.xlu2 %508  ;;  %v495_v45 = vpop.xlane.xlu1 %494 }
 0x136   : > { %v481_v46 = vpop.xlane.xlu0 %480  ;;  %v708_v42 = vperm.slane %v495_v45, %v1412_v14  ;;  %v721_v9 = vperm.slane %v509_v39, %v1394_v55 }
 0x137   : > { %v695_v48 = vperm.slane %v481_v46, %v1434_v44 }
 0x138   : > { %v709_v4 = vsel %vm631_vm5, %v708_v42, %v707_v61  ;;  %v722_v22 = vsel %vm627_vm4, %v721_v9, %v720_v16 }
 0x139   : > { %v696_v51 = vsel %vm635_vm6, %v695_v48, %v694_v49 }
 0x13a   : > { %v749_v53 = vsel %vm748_vm10, %v696_v51, %v747_v28 }
 0x13d   : > { %v497_v59 = vpop.xlane.xlu1 %496  ;;  %v511_v1 = vpop.xlane.xlu2 %510 }
 0x13e   : > { %v523_v60 = vpop.xlane.xlu0 %522  ;;  %v710_v0 = vperm.slane %v497_v59, %v1434_v44  ;;  %v723_v11 = vperm.slane %v511_v1, %v1412_v14 }
 0x13f   : > { %v734_v21 = vperm.slane %v523_v60, %v1368_v15 }
 0x140   : > { %v711_v41 = vsel %vm635_vm6, %v710_v0, %v709_v4  ;;  %v724_v18 = vsel %vm631_vm5, %v723_v11, %v722_v22 }
 0x141   : > { %v751_v8 = vsel %vm750_vm11, %v711_v41, %v749_v53  ;;  %v735_v27 = vsel %vm623_vm3, %v734_v21, %v733_v25 }
 0x145   : > { %v513_v17 = vpop.xlane.xlu1 %512  ;;  %v527_v19 = vpop.xlane.xlu2 %526 }
 0x146   : > { %v525_v20 = vpop.xlane.xlu0 %524  ;;  %v725_v23 = vperm.slane %v513_v17, %v1434_v44  ;;  %v738_v28 = vperm.slane %v527_v19, %v1412_v14  ;;  %v954_v14 = vld [vmem:[%s1560_s2] ss:$0 sm:$0xff] }
 0x147   : > { %v736_v3 = vperm.slane %v525_v20, %v1394_v55 }
 0x148   : > { %v726_v26 = vsel %vm635_vm6, %v725_v23, %v724_v18 }
 0x149   : > { %v753_v24 = vsel %vm752_vm12, %v726_v26, %v751_v8  ;;  %v737_v15 = vsel %vm627_vm4, %v736_v3, %v735_v27 }
 0x14a   : > { %v739_v55 = vsel %vm631_vm5, %v738_v28, %v737_v15 }
 0x14e   : > { %v529_v29 = vpop.xlane.xlu0 %528 }
 0x14f   : > { %v740_v30 = vperm.slane %v529_v29, %v1434_v44 }
 0x151   : > { %v741_v31 = vsel %vm635_vm6, %v740_v30, %v739_v55 }
 0x152   : > { %v755_v32 = vsel %vm754_vm13, %v741_v31, %v753_v24 }
 0x153   : > { %888 = vmatmul.msk.f32.vlgmr.msra.gmra.mxu0 %vm756_vm14, %v755_v32 }
 0x1d0   : > { %v776_v44 = vpop.f32.mrf.mxu0 }
 0x1d1   : > { %v777_v34 = vadd.f32 %v954_v14, %v776_v44 }
 0x1d3   : > { %779 = vst [vmem:[%s208_s24] sm:$0xff] %v777_v34 }
 0x1d4   : > { %1042 = shalt.err (!%p1039_p10)
}
 0x1d5   : > { %901 = dma.vmem_to_hbm [thread:$0]  (%p1179_p3), %s794_s29, 128, %s796_s30, %s781_s7  }
 0x1d6 PF: > { %s807_s6 = sand.u32 1, %s1073_s12   ;;  %p1567_p12 = scmp.ge.s32.totalorder %s1085_s15, 2 }
 0x1d7   : > { %s808_s18 = scalar_lea.sflag [#allocation4], %s807_s6 }
 0x1d8   : > { %p912_p13 = pnand %p1567_p12, %p1145_p6 }
 0x1da   : > { %p913_p0 = pneg %p912_p13 }
 0x1dc   : > { %1068 = dma.done.wait (%p913_p0), %s808_s18, 128  }
 0x1dd   : > { %1070 = vsyncadd (%p913_p0), %s808_s18, 4294967168  ;;  %p17_p5 = scmp.ge.s32.totalorder %s1163_s26, 4   ;;  %s1568_s12 = smov %s1077_s13 }
 0x1de   : > { %s1569_s13 = smov %s1081_s14  ;;  %s1570_s14 = smov %s1175_s4 }
 0x1df   : > { %s1571_s15 = smov %s1163_s26  ;;  %19 = sbr.rel (!%p17_p5) target bundleno = 6 (0x6), region = 81 }
 0x1e4   :  { %814 = vsyncpa [#allocation3], 1 }
 0x1e5   :  { %816 = vsyncpa [#allocation3 + $0x1], 1 }
 0x1e6   :  { %817 = vsyncpa [#allocation6], 1 }
 0x1e7   :  { %818 = vsyncpa [#allocation4], 1 }
 0x1e8   :  { %820 = vsyncpa [#allocation4 + $0x1], 1 }

</bundles_post_ra>
